<compile_context>
chip_gen: v5e
topology: v5e:2x2
jax: 0.10.0
libtpu: 0.0.40
codegen_flags: <defaults>
</compile_context>

<pallas_src>
import functools

import jax
import jax.numpy as jnp
from jax.experimental import pallas as pl
from jax.experimental.pallas import tpu as pltpu

_LANE = 128          # lane-dense padded output width
_DEFAULT_TB = 1024   # batch tile (rows) for large-B streaming


def _mlp_kernel(x_ref,
                w1_ref, b1_ref,
                w2_ref, b2_ref,
                w3_ref, b3_ref,
                w4_ref, b4_ref,
                o_ref):
    # Layer 1: Linear(100 -> 70) + ReLU
    h = jnp.dot(x_ref[...], w1_ref[...], preferred_element_type=jnp.float32)
    h = jnp.maximum(h + b1_ref[...], 0.0)
    # Layer 2: Linear(70 -> 50) + ReLU
    h = jnp.dot(h, w2_ref[...], preferred_element_type=jnp.float32)
    h = jnp.maximum(h + b2_ref[...], 0.0)
    # Layer 3: Linear(50 -> 20) + ReLU
    h = jnp.dot(h, w3_ref[...], preferred_element_type=jnp.float32)
    h = jnp.maximum(h + b3_ref[...], 0.0)
    # Layer 4: Linear(20 -> num_classes, lane-padded to 128) + Sigmoid
    h = jnp.dot(h, w4_ref[...], preferred_element_type=jnp.float32)
    h = h + b4_ref[...]
    o_ref[...] = jax.nn.sigmoid(h).astype(o_ref.dtype)


def _round_up(n, m):
    return ((n + m - 1) // m) * m


@functools.partial(jax.jit, static_argnames=("block_rows",))
def domain_classifier_forward(x, params, *, block_rows=_DEFAULT_TB):
    """x: (B, 100) float32; params: dict of transposed (in, out) weights/biases."""
    w1, b1 = params["w1"], params["b1"]
    w2, b2 = params["w2"], params["b2"]
    w3, b3 = params["w3"], params["b3"]
    w4, b4 = params["w4"], params["b4"]

    B, F = x.shape
    num_classes = w4.shape[1]

    # Lane-dense final layer: pad last weight/bias to 128 output columns
    # (zeros -> padded outputs are sigmoid(0)=0.5 and are sliced off below).
    w4p = jnp.zeros((w4.shape[0], _LANE), w4.dtype).at[:, :num_classes].set(w4)
    b4p = jnp.zeros((1, _LANE), b4.dtype).at[:, :num_classes].set(b4)

    # Batch tile: multiple of 8, at most block_rows, then pad B up to a
    # multiple of the tile so the grid divides evenly.
    tb = min(int(block_rows), max(8, _round_up(B, 8)))
    tb = _round_up(tb, 8)
    b_pad = _round_up(B, tb)
    if b_pad != B:
        x = jnp.pad(x, ((0, b_pad - B), (0, 0)))

    grid = (b_pad // tb,)

    # Resident (non-moving) specs for weights/biases.
    def _resident(shape):
        return pl.BlockSpec(shape, lambda i: (0, 0), memory_space=pltpu.VMEM)

    flops = 2 * B * (100 * 70 + 70 * 50 + 50 * 20 + 20 * num_classes)
    bytes_accessed = (
        B * (F + num_classes) * 4
        + sum(int(p.size) for p in (w1, b1, w2, b2, w3, b3, w4, b4)) * 4
    )
    cost = pl.CostEstimate(flops=flops,
                           transcendentals=B * num_classes,
                           bytes_accessed=bytes_accessed)

    out_padded = pl.pallas_call(
        _mlp_kernel,
        out_shape=jax.ShapeDtypeStruct((b_pad, _LANE), jnp.float32),
        grid=grid,
        in_specs=[
            pl.BlockSpec((tb, F), lambda i: (i, 0), memory_space=pltpu.VMEM),
            _resident(w1.shape), _resident(b1.shape),
            _resident(w2.shape), _resident(b2.shape),
            _resident(w3.shape), _resident(b3.shape),
            _resident(w4p.shape), _resident(b4p.shape),
        ],
        out_specs=pl.BlockSpec((tb, _LANE), lambda i: (i, 0),
                               memory_space=pltpu.VMEM),
        compiler_params=pltpu.CompilerParams(
            dimension_semantics=("parallel",)),
        cost_estimate=cost,
    )(x, w1, b1, w2, b2, w3, b3, w4p, b4p)

    return out_padded[:B, :num_classes]


def _xavier_uniform(key, fan_in, fan_out, gain):
    # Matches torch.nn.init.xavier_uniform_ (bound depends only on fan_in+fan_out,
    # so building the transposed (in, out) matrix gives the same distribution).
    bound = gain * jnp.sqrt(6.0 / (fan_in + fan_out))
    return jax.random.uniform(
        key, (fan_in, fan_out), dtype=jnp.float32, minval=-bound, maxval=bound
    )


def init_params(key, num_classes):
    # DomainClassifier.initialize(): xavier_uniform with tanh gain (= 5/3) on
    # all Linear weights. Biases keep PyTorch's default U(-1/sqrt(fan_in), +).
    tanh_gain = 5.0 / 3.0
    dims = [(100, 70), (70, 50), (50, 20), (20, num_classes)]
    params = {}
    keys = jax.random.split(key, 2 * len(dims))
    for i, (fan_in, fan_out) in enumerate(dims):
        wk, bk = keys[2 * i], keys[2 * i + 1]
        params[f"w{i+1}"] = _xavier_uniform(wk, fan_in, fan_out, tanh_gain)
        bb = 1.0 / jnp.sqrt(float(fan_in))
        params[f"b{i+1}"] = jax.random.uniform(
            bk, (1, fan_out), dtype=jnp.float32, minval=-bb, maxval=bb
        )
    return params


def _reference_forward(x, params):
    h = jnp.maximum(x @ params["w1"] + params["b1"], 0.0)
    h = jnp.maximum(h @ params["w2"] + params["b2"], 0.0)
    h = jnp.maximum(h @ params["w3"] + params["b3"], 0.0)
    h = h @ params["w4"] + params["b4"]
    return jax.nn.sigmoid(h)


if __name__ == "__main__":
    key = jax.random.PRNGKey(0)
    k_x, k_p, k_x2 = jax.random.split(key, 3)

    num_classes = 2
    params = init_params(k_p, num_classes)

    # Small test case (single grid step).
    batch = 8
    x = jax.random.normal(k_x, (batch, 100), dtype=jnp.float32)
    out = jax.block_until_ready(domain_classifier_forward(x, params))
    ref = _reference_forward(x, params)
    assert out.shape == (batch, num_classes)
    assert jnp.allclose(out, ref, atol=1e-5, rtol=1e-5)

    # Larger, non-tile-aligned batch to exercise the grid + padding path.
    batch2 = 300
    x2 = jax.random.normal(k_x2, (batch2, 100), dtype=jnp.float32)
    out2 = jax.block_until_ready(
        domain_classifier_forward(x2, params, block_rows=128))
    ref2 = _reference_forward(x2, params)
    assert out2.shape == (batch2, num_classes)
    assert jnp.allclose(out2, ref2, atol=1e-5, rtol=1e-5)

    print("KERNEL_OK")
</pallas_src>

<mosaic_0001>
module attributes {stable_mosaic.version = 11 : i64} {
  func.func @_mlp_kernel(%arg0: i32, %arg1: memref<8x100xf32, #tpu.memory_space<vmem>>, %arg2: memref<100x70xf32, #tpu.memory_space<vmem>>, %arg3: memref<1x70xf32, #tpu.memory_space<vmem>>, %arg4: memref<70x50xf32, #tpu.memory_space<vmem>>, %arg5: memref<1x50xf32, #tpu.memory_space<vmem>>, %arg6: memref<50x20xf32, #tpu.memory_space<vmem>>, %arg7: memref<1x20xf32, #tpu.memory_space<vmem>>, %arg8: memref<20x128xf32, #tpu.memory_space<vmem>>, %arg9: memref<1x128xf32, #tpu.memory_space<vmem>>, %arg10: memref<8x128xf32, #tpu.memory_space<vmem>>) attributes {dimension_semantics = [#tpu.dimension_semantics<parallel>], iteration_bounds = array<i64: 1>, scalar_prefetch = 0 : i64, scratch_operands = 0 : i64, tpu.core_type = #tpu.core_type<tc>, window_params = [{transform_indices = @transform_0, window_bounds = array<i64: 8, 100>}, {pipeline_mode = #tpu.pipeline_mode<synchronous>, transform_indices = @transform_1, window_bounds = array<i64: 100, 70>}, {pipeline_mode = #tpu.pipeline_mode<synchronous>, transform_indices = @transform_2, window_bounds = array<i64: 1, 70>}, {pipeline_mode = #tpu.pipeline_mode<synchronous>, transform_indices = @transform_3, window_bounds = array<i64: 70, 50>}, {pipeline_mode = #tpu.pipeline_mode<synchronous>, transform_indices = @transform_4, window_bounds = array<i64: 1, 50>}, {pipeline_mode = #tpu.pipeline_mode<synchronous>, transform_indices = @transform_5, window_bounds = array<i64: 50, 20>}, {pipeline_mode = #tpu.pipeline_mode<synchronous>, transform_indices = @transform_6, window_bounds = array<i64: 1, 20>}, {pipeline_mode = #tpu.pipeline_mode<synchronous>, transform_indices = @transform_7, window_bounds = array<i64: 20, 128>}, {pipeline_mode = #tpu.pipeline_mode<synchronous>, transform_indices = @transform_8, window_bounds = array<i64: 1, 128>}, {transform_indices = @transform_9, window_bounds = array<i64: 8, 128>}]} {
    %c0 = arith.constant 0 : index
    %c0_0 = arith.constant 0 : index
    %0 = vector.load %arg1[%c0, %c0_0] : memref<8x100xf32, #tpu.memory_space<vmem>>, vector<8x100xf32>
    %c0_1 = arith.constant 0 : index
    %c0_2 = arith.constant 0 : index
    %1 = vector.load %arg2[%c0_1, %c0_2] : memref<100x70xf32, #tpu.memory_space<vmem>>, vector<100x70xf32>
    %cst = arith.constant dense<0.000000e+00> : vector<8x70xf32>
    %2 = tpu.matmul %0, %1, %cst {dimension_numbers = #tpu.dot_dimension_numbers<[1], [0], [0], [1], [0, 0, 1, 1], [], []>} : vector<8x100xf32>, vector<100x70xf32>, vector<8x70xf32> -> vector<8x70xf32>
    %c0_3 = arith.constant 0 : index
    %c0_4 = arith.constant 0 : index
    %3 = vector.load %arg3[%c0_3, %c0_4] : memref<1x70xf32, #tpu.memory_space<vmem>>, vector<1x70xf32>
    %4 = vector.broadcast %3 : vector<1x70xf32> to vector<8x70xf32>
    %5 = arith.addf %2, %4 : vector<8x70xf32>
    %cst_5 = arith.constant 0.000000e+00 : f32
    %6 = vector.broadcast %cst_5 : f32 to vector<8x70xf32>
    %7 = arith.maximumf %5, %6 : vector<8x70xf32>
    %c0_6 = arith.constant 0 : index
    %c0_7 = arith.constant 0 : index
    %8 = vector.load %arg4[%c0_6, %c0_7] : memref<70x50xf32, #tpu.memory_space<vmem>>, vector<70x50xf32>
    %cst_8 = arith.constant dense<0.000000e+00> : vector<8x50xf32>
    %9 = tpu.matmul %7, %8, %cst_8 {dimension_numbers = #tpu.dot_dimension_numbers<[1], [0], [0], [1], [0, 0, 1, 1], [], []>} : vector<8x70xf32>, vector<70x50xf32>, vector<8x50xf32> -> vector<8x50xf32>
    %c0_9 = arith.constant 0 : index
    %c0_10 = arith.constant 0 : index
    %10 = vector.load %arg5[%c0_9, %c0_10] : memref<1x50xf32, #tpu.memory_space<vmem>>, vector<1x50xf32>
    %11 = vector.broadcast %10 : vector<1x50xf32> to vector<8x50xf32>
    %12 = arith.addf %9, %11 : vector<8x50xf32>
    %cst_11 = arith.constant 0.000000e+00 : f32
    %13 = vector.broadcast %cst_11 : f32 to vector<8x50xf32>
    %14 = arith.maximumf %12, %13 : vector<8x50xf32>
    %c0_12 = arith.constant 0 : index
    %c0_13 = arith.constant 0 : index
    %15 = vector.load %arg6[%c0_12, %c0_13] : memref<50x20xf32, #tpu.memory_space<vmem>>, vector<50x20xf32>
    %cst_14 = arith.constant dense<0.000000e+00> : vector<8x20xf32>
    %16 = tpu.matmul %14, %15, %cst_14 {dimension_numbers = #tpu.dot_dimension_numbers<[1], [0], [0], [1], [0, 0, 1, 1], [], []>} : vector<8x50xf32>, vector<50x20xf32>, vector<8x20xf32> -> vector<8x20xf32>
    %c0_15 = arith.constant 0 : index
    %c0_16 = arith.constant 0 : index
    %17 = vector.load %arg7[%c0_15, %c0_16] : memref<1x20xf32, #tpu.memory_space<vmem>>, vector<1x20xf32>
    %18 = vector.broadcast %17 : vector<1x20xf32> to vector<8x20xf32>
    %19 = arith.addf %16, %18 : vector<8x20xf32>
    %cst_17 = arith.constant 0.000000e+00 : f32
    %20 = vector.broadcast %cst_17 : f32 to vector<8x20xf32>
    %21 = arith.maximumf %19, %20 : vector<8x20xf32>
    %c0_18 = arith.constant 0 : index
    %c0_19 = arith.constant 0 : index
    %22 = vector.load %arg8[%c0_18, %c0_19] : memref<20x128xf32, #tpu.memory_space<vmem>>, vector<20x128xf32>
    %cst_20 = arith.constant dense<0.000000e+00> : vector<8x128xf32>
    %23 = tpu.matmul %21, %22, %cst_20 {dimension_numbers = #tpu.dot_dimension_numbers<[1], [0], [0], [1], [0, 0, 1, 1], [], []>} : vector<8x20xf32>, vector<20x128xf32>, vector<8x128xf32> -> vector<8x128xf32>
    %c0_21 = arith.constant 0 : index
    %c0_22 = arith.constant 0 : index
    %24 = vector.load %arg9[%c0_21, %c0_22] : memref<1x128xf32, #tpu.memory_space<vmem>>, vector<1x128xf32>
    %25 = vector.broadcast %24 : vector<1x128xf32> to vector<8x128xf32>
    %26 = arith.addf %23, %25 : vector<8x128xf32>
    %27 = arith.negf %26 : vector<8x128xf32>
    %28 = math.exp %27 : vector<8x128xf32>
    %cst_23 = arith.constant 1.000000e+00 : f32
    %29 = vector.broadcast %cst_23 : f32 to vector<8x128xf32>
    %30 = arith.addf %29, %28 : vector<8x128xf32>
    %31 = arith.divf %29, %30 : vector<8x128xf32>
    %c0_24 = arith.constant 0 : index
    %c0_25 = arith.constant 0 : index
    %32 = vector.load %arg10[%c0_24, %c0_25] : memref<8x128xf32, #tpu.memory_space<vmem>>, vector<8x128xf32>
    tpu.vector_store %arg10[%c0_24, %c0_25], %31 {strides = array<i32>} : memref<8x128xf32, #tpu.memory_space<vmem>>, vector<8x128xf32>,
    return
  }
  func.func @transform_0(%arg0: i32) -> (i32, i32) {
    %c0_i32 = arith.constant 0 : i32
    %c0_i32_0 = arith.constant 0 : i32
    return %arg0, %c0_i32 : i32, i32
  }
  func.func @transform_1(%arg0: i32) -> (i32, i32) {
    %c0_i32 = arith.constant 0 : i32
    %c0_i32_0 = arith.constant 0 : i32
    %c0_i32_1 = arith.constant 0 : i32
    return %c0_i32, %c0_i32_0 : i32, i32
  }
  func.func @transform_2(%arg0: i32) -> (i32, i32) {
    %c0_i32 = arith.constant 0 : i32
    %c0_i32_0 = arith.constant 0 : i32
    %c0_i32_1 = arith.constant 0 : i32
    return %c0_i32, %c0_i32_0 : i32, i32
  }
  func.func @transform_3(%arg0: i32) -> (i32, i32) {
    %c0_i32 = arith.constant 0 : i32
    %c0_i32_0 = arith.constant 0 : i32
    %c0_i32_1 = arith.constant 0 : i32
    return %c0_i32, %c0_i32_0 : i32, i32
  }
  func.func @transform_4(%arg0: i32) -> (i32, i32) {
    %c0_i32 = arith.constant 0 : i32
    %c0_i32_0 = arith.constant 0 : i32
    %c0_i32_1 = arith.constant 0 : i32
    return %c0_i32, %c0_i32_0 : i32, i32
  }
  func.func @transform_5(%arg0: i32) -> (i32, i32) {
    %c0_i32 = arith.constant 0 : i32
    %c0_i32_0 = arith.constant 0 : i32
    %c0_i32_1 = arith.constant 0 : i32
    return %c0_i32, %c0_i32_0 : i32, i32
  }
  func.func @transform_6(%arg0: i32) -> (i32, i32) {
    %c0_i32 = arith.constant 0 : i32
    %c0_i32_0 = arith.constant 0 : i32
    %c0_i32_1 = arith.constant 0 : i32
    return %c0_i32, %c0_i32_0 : i32, i32
  }
  func.func @transform_7(%arg0: i32) -> (i32, i32) {
    %c0_i32 = arith.constant 0 : i32
    %c0_i32_0 = arith.constant 0 : i32
    %c0_i32_1 = arith.constant 0 : i32
    return %c0_i32, %c0_i32_0 : i32, i32
  }
  func.func @transform_8(%arg0: i32) -> (i32, i32) {
    %c0_i32 = arith.constant 0 : i32
    %c0_i32_0 = arith.constant 0 : i32
    %c0_i32_1 = arith.constant 0 : i32
    return %c0_i32, %c0_i32_0 : i32, i32
  }
  func.func @transform_9(%arg0: i32) -> (i32, i32) {
    %c0_i32 = arith.constant 0 : i32
    %c0_i32_0 = arith.constant 0 : i32
    return %arg0, %c0_i32 : i32, i32
  }
}

</mosaic_0001>

<bundles_post_ra>
// kernel: domain_classifier_forward.1
= control target key start
LH: loop header
LB: loop body
LE: loop exit
PB: predicated region body
PF: predicated region fallthrough
CT: control target
= control target key end

     0   :  { %vm54_vm0 = vcmask 1043456   ;;  %vm96_vm1 = vcmask 1045504   ;;  %vm50_vm2 = vcmask 818176   ;;  %vm136_vm3 = vcmask 1041408   ;;  %s402_s1 = inlined_call_operand.vmem [shape: f32[100,70], index: 1, kind: input, shape index: {}]   ;;  %s403_s3 = inlined_call_operand.vmem [shape: f32[70,50], index: 3, kind: input, shape index: {}]   ;;  %s404_s2 = inlined_call_operand.vmem [shape: f32[1,70], index: 2, kind: input, shape index: {}]   ;;  %s405_s0 = inlined_call_operand.vmem [shape: f32[8,100], index: 0, kind: input, shape index: {}]   ;;  %s406_s4 = inlined_call_operand.vmem [shape: f32[1,50], index: 4, kind: input, shape index: {}]   ;;  %s407_s5 = inlined_call_operand.vmem [shape: f32[50,20], index: 5, kind: input, shape index: {}]   ;;  %s408_s6 = inlined_call_operand.vmem [shape: f32[1,20], index: 6, kind: input, shape index: {}]   ;;  %s409_s8 = inlined_call_operand.vmem [shape: f32[1,128], index: 8, kind: input, shape index: {}]   ;;  %s410_s7 = inlined_call_operand.vmem [shape: f32[20,128], index: 7, kind: input, shape index: {}]   ;;  %s411_s9 = inlined_call_operand.vmem [shape: f32[8,128], index: 9, kind: output, shape index: {}]  }
   0x1   :  { %v45_v0 = vld [vmem:[%s402_s1 + $0x60] sm:$0xf]  ;;  %v44_v1 = vld [vmem:[%s402_s1 + $0x58] sm:$0xff]  ;;  %v43_v2 = vld [vmem:[%s402_s1 + $0x50] sm:$0xff]  ;;  %vm92_vm4 = vcmask 572416   ;;  %vm132_vm5 = vcmask 408576  }
   0x2   :  { %219 = vmatpush.msk.msra.mxu0 %vm54_vm0, %v45_v0  ;;  %v42_v3 = vld [vmem:[%s402_s1 + $0x48] sm:$0xff]  ;;  %v87_v4 = vld [vmem:[%s403_s3 + $0x40] sm:$0x3f]  ;;  %v86_v5 = vld [vmem:[%s403_s3 + $0x38] sm:$0xff]  ;;  %vm168_vm6 = vcmask 162816  }
   0x3   :  { %221 = vmatpush.msk.msra.mxu1 %vm96_vm1, %v87_v4  ;;  %v41_v6 = vld [vmem:[%s402_s1 + $0x40] sm:$0xff]  ;;  %v85_v7 = vld [vmem:[%s403_s3 + $0x30] sm:$0xff]  ;;  %v40_v8 = vld [vmem:[%s402_s1 + $0x38] sm:$0xff] }
   0x4   :  { %62 = vmatpush.msra.mxu0 %v44_v1  ;;  %v84_v9 = vld [vmem:[%s403_s3 + $0x28] sm:$0xff]  ;;  %v39_v10 = vld [vmem:[%s402_s1 + $0x30] sm:$0xff]  ;;  %v83_v11 = vld [vmem:[%s403_s3 + $0x20] sm:$0xff] }
   0x5   :  { %108 = vmatpush.msra.mxu1 %v86_v5  ;;  %v38_v12 = vld [vmem:[%s402_s1 + $0x28] sm:$0xff]  ;;  %v82_v13 = vld [vmem:[%s403_s3 + $0x18] sm:$0xff]  ;;  %v37_v14 = vld [vmem:[%s402_s1 + $0x20] sm:$0xff] }
   0x6   :  { %63 = vmatpush.msra.mxu0 %v43_v2  ;;  %v36_v15 = vld [vmem:[%s402_s1 + $0x18] sm:$0xff]  ;;  %v35_v16 = vld [vmem:[%s402_s1 + $0x10] sm:$0xff]  ;;  %v34_v17 = vld [vmem:[%s402_s1 + $0x8] sm:$0xff] }
   0x7   :  { %109 = vmatpush.msra.mxu1 %v85_v7  ;;  %v33_v18 = vld [vmem:[%s402_s1] sm:$0xff]  ;;  %v81_v20 = vld [vmem:[%s403_s3 + $0x10] sm:$0xff]  ;;  %v80_v21 = vld [vmem:[%s403_s3 + $0x8] sm:$0xff] }
   0x8   :  { %64 = vmatpush.msra.mxu0 %v42_v3  ;;  %v32_v19 = vld [vmem:[%s405_s0] sm:$0xff]  ;;  %v127_v23 = vld [vmem:[%s407_s5 + $0x30] sm:$0x3]  ;;  %v126_v24 = vld [vmem:[%s407_s5 + $0x28] sm:$0xff] }
   0x9   :  { %110 = vmatpush.msra.mxu1 %v84_v9  ;;  %v79_v22 = vld [vmem:[%s403_s3] sm:$0xff]  ;;  %223 = vmatpush.msk.msra.mxu2 %vm136_vm3, %v127_v23  ;;  %v124_v26 = vld [vmem:[%s407_s5 + $0x18] sm:$0xff]  ;;  %v123_v31 = vld [vmem:[%s407_s5 + $0x10] sm:$0xff] }
   0xa   :  { %65 = vmatpush.msra.mxu0 %v41_v6  ;;  %v125_v25 = vld [vmem:[%s407_s5 + $0x20] sm:$0xff]  ;;  %v122_v32 = vld [vmem:[%s407_s5 + $0x8] sm:$0xff]  ;;  %v163_v38 = vld [vmem:[%s410_s7 + $0x10] sm:$0xf] }
   0xb   :  { %111 = vmatpush.msra.mxu1 %v83_v11  ;;  %150 = vmatpush.msra.mxu2 %v126_v24  ;;  %v228_v27 = vld [vmem:[%s404_s2] ss:$0 sm:$0xff]  ;;  %v162_v39 = vld [vmem:[%s410_s7 + $0x8] sm:$0xff] }
   0xc   :  { %66 = vmatpush.msra.mxu0 %v40_v8  ;;  %v121_v33 = vld [vmem:[%s407_s5] sm:$0xff]  ;;  %225 = vmatpush.msk.msra.mxu3 %vm54_vm0, %v163_v38 }
   0xd   :  { %112 = vmatpush.msra.mxu1 %v82_v13  ;;  %151 = vmatpush.msra.mxu2 %v125_v25  ;;  %v229_v34 = vld [vmem:[%s406_s4] ss:$0 sm:$0xff] }
   0xe   :  { %67 = vmatpush.msra.mxu0 %v39_v10  ;;  %189 = vmatpush.msra.mxu3 %v162_v39  ;;  %v161_v40 = vld [vmem:[%s410_s7] sm:$0xff] }
   0xf   :  { %113 = vmatpush.msra.mxu1 %v81_v20  ;;  %152 = vmatpush.msra.mxu2 %v124_v26  ;;  %v230_v41 = vld [vmem:[%s408_s6] ss:$0 sm:$0xff] }
  0x10   :  { %68 = vmatpush.msra.mxu0 %v38_v12  ;;  %190 = vmatpush.msra.mxu3 %v161_v40  ;;  %v231_v45 = vld [vmem:[%s409_s8] ss:$0 sm:$0xff] }
  0x11   :  { %114 = vmatpush.msra.mxu1 %v80_v21  ;;  %153 = vmatpush.msra.mxu2 %v123_v31 }
  0x12   :  { %69 = vmatpush.msra.mxu0 %v37_v14 }
  0x13   :  { %115 = vmatpush.msra.mxu1 %v79_v22  ;;  %154 = vmatpush.msra.mxu2 %v122_v32 }
  0x14   :  { %70 = vmatpush.msra.mxu0 %v36_v15 }
  0x15   :  { %155 = vmatpush.msra.mxu2 %v121_v33 }
  0x16   :  { %71 = vmatpush.msra.mxu0 %v35_v16 }
  0x18   :  { %72 = vmatpush.msra.mxu0 %v34_v17 }
  0x1a   :  { %73 = vmatpush.msra.mxu0 %v33_v18 }
  0x1b   :  { %220 = vmatmul.msk.f32.vlgmr.msra.gmra.mxu0 %vm50_vm2, %v32_v19 }
  0x98   :  { %v75_v28 = vpop.f32.mrf.mxu0 }
  0x99   :  { %v76_v29 = vadd.f32 %v228_v27, %v75_v28 }
  0x9b   :  { %v78_v30 = vmax.f32 %v76_v29, 0.0 }
  0x9d   :  { %222 = vmatmul.msk.f32.vlgmr.msra.gmra.mxu1 %vm92_vm4, %v78_v30 }
 0x11a   :  { %v117_v35 = vpop.f32.mrf.mxu1 }
 0x11b   :  { %v118_v36 = vadd.f32 %v229_v34, %v117_v35 }
 0x11d   :  { %v120_v37 = vmax.f32 %v118_v36, 0.0 }
 0x11f   :  { %224 = vmatmul.msk.f32.vlgmr.msra.gmra.mxu2 %vm132_vm5, %v120_v37 }
 0x1a2   :  { %v157_v42 = vpop.f32.mrf.mxu2 }
 0x1a3   :  { %v158_v43 = vadd.f32 %v230_v41, %v157_v42 }
 0x1a5   :  { %v160_v44 = vmax.f32 %v158_v43, 0.0 }
 0x1a7   :  { %226 = vmatmul.msk.f32.vlgmr.msra.gmra.mxu3 %vm168_vm6, %v160_v44 }
 0x22a   :  { %v192_v46 = vpop.f32.mrf.mxu3 }
 0x22b   :  { %v193_v47 = vadd.f32 %v231_v45, %v192_v46 }
 0x22d   :  { %v227_v48 = vmul.f32 -1.442695, %v193_v47 }
 0x22f   :  { %232 = vpow2.f32 %v227_v48 }
 0x235   :  { %v233_v49 = vpop.eup %232 }
 0x236   :  { %v198_v50 = vadd.f32 1.0, %v233_v49 }
 0x238   :  { %234 = vrcp.f32 %v198_v50  ;;  %v210_v54 = vand.u32 2147483648, %v198_v50  ;;  %v208_v56 = vand.u32 2147483647, %v198_v50  ;;  %vm204_vm8 = vweird.f32 %v198_v50 }
 0x23a   :  { %v211_v58 = vor.u32 1.1754944e-38, %v210_v54  ;;  %vm209_vm10 = vcmp.eq.f32.partialorder %v208_v56, 8.507059e+37 }
 0x23e   :  { %v235_v51 = vpop.eup %234 }
 0x23f   :  { %v200_v52 = vmul.f32 %v235_v51, %v198_v50  ;;  %vm205_vm7 = vweird.f32 %v235_v51 }
 0x240   :  { %vm206_vm9 = vmor %vm204_vm8, %vm205_vm7 }
 0x241   :  { %v201_v53 = vsub.f32 1.0, %v200_v52 }
 0x243   :  { %v202_v55 = vmul.f32 %v235_v51, %v201_v53 }
 0x245   :  { %v203_v57 = vadd.f32 %v235_v51, %v202_v55 }
 0x247   :  { %v207_v59 = vsel %vm206_vm9, %v235_v51, %v203_v57 }
 0x248   :  { %v212_v60 = vsel %vm209_vm10, %v211_v58, %v207_v59 }
 0x249   :  { %214 = vst [vmem:[%s411_s9] sm:$0xff] %v212_v60 }

</bundles_post_ra>
